<compile_context>
chip_gen: v7x
topology: tpu7x:2x2x1
jax: 0.10.0
libtpu: 0.0.40
codegen_flags: <defaults>
</compile_context>

<pallas_src>
import math

import jax
import jax.numpy as jnp
from jax import lax
from jax.experimental import pallas as pl
from jax.experimental.pallas import tpu as pltpu

_EPS = 1e-12
_BIG = 1e30       # half-norm assigned to padded columns (never the hard negative)


# -----------------------------------------------------------------------------
# Resident-x kernel: 1-D grid over row blocks; the full (padded) feature matrix
# stays resident in VMEM and is swept with an in-kernel loop over column chunks.
# -----------------------------------------------------------------------------
def _make_resident_kernel(col_chunk):
    def kernel(m_ref, xr_ref, xc_ref, hsqr_ref, hsqc_ref, tcol_ref, trow_ref,
               hinge_ref):
        # m_ref:    (1, 1) f32 margin                                   [SMEM]
        # xr_ref:   (tm, d) row block of features
        # xc_ref:   (n_pad, d) full feature matrix (resident, loaded once)
        # hsqr_ref: (tm, 1) f32   0.5*||x_i||^2 for the row block
        # hsqc_ref: (n_chunks, col_chunk) f32   0.5*||x_j||^2, chunked layout
        # tcol_ref: (tm, 1) i32 row labels
        # trow_ref: (n_chunks, col_chunk) i32 column labels
        # hinge_ref:(tm, 1) f32 per-row hinge
        xr = xr_ref[...]
        tcol = tcol_ref[...]
        tm = xr.shape[0]
        n_chunks = xc_ref.shape[0] // col_chunk

        def body(c, carry):
            ap, an = carry
            off = pl.multiple_of(c * col_chunk, col_chunk)
            xc = xc_ref[pl.ds(off, col_chunk), :]                      # (tc, d)
            # Gram on the MXU, contracting the last dim of both operands
            # (no explicit transpose / relayout).
            gram = lax.dot_general(xr, xc, (((1,), (1,)), ((), ())),
                                   preferred_element_type=jnp.float32)  # (tm, tc)
            hsq_c = hsqc_ref[pl.ds(c, 1), :]                           # (1, tc)
            trow = trow_ref[pl.ds(c, 1), :]                            # (1, tc)
            # Mine on 0.5*dist^2 - 0.5*||x_i||^2 == hsq_c - gram (monotone in
            # dist, row-constant term added back at finalize).
            tmp = hsq_c - gram                                         # (tm, tc)
            mask = tcol == trow                                        # (tm, tc)
            ap = jnp.maximum(
                ap, jnp.max(jnp.where(mask, tmp, -jnp.inf), axis=1, keepdims=True))
            an = jnp.minimum(
                an, jnp.min(jnp.where(mask, jnp.inf, tmp), axis=1, keepdims=True))
            return ap, an

        init = (jnp.full((tm, 1), -jnp.inf, dtype=jnp.float32),
                jnp.full((tm, 1), jnp.inf, dtype=jnp.float32))
        ap, an = lax.fori_loop(0, n_chunks, body, init)

        eps = jnp.float32(_EPS)
        hsq_r = hsqr_ref[...]                                          # (tm, 1)
        d_ap = jnp.sqrt(jnp.maximum(2.0 * (ap + hsq_r), eps))
        d_an = jnp.sqrt(jnp.maximum(2.0 * (an + hsq_r), eps))
        # MarginRankingLoss with y=1 (mean taken in the wrapper on valid rows).
        hinge_ref[...] = jnp.maximum(d_ap - d_an + m_ref[0, 0], 0.0)

    return kernel


# -----------------------------------------------------------------------------
# Streaming fallback (x too large to keep resident): 2-D grid, row blocks
# "parallel", column blocks "arbitrary"; running max/min in VMEM scratch.
# -----------------------------------------------------------------------------
def _streaming_kernel(m_ref, xr_ref, xc_ref, hsqr_ref, hsqc_ref, tcol_ref,
                      trow_ref, hinge_ref, ap_acc, an_acc):
    j = pl.program_id(1)

    @pl.when(j == 0)
    def _():
        ap_acc[...] = jnp.full_like(ap_acc, -jnp.inf)
        an_acc[...] = jnp.full_like(an_acc, jnp.inf)

    gram = lax.dot_general(xr_ref[...], xc_ref[...], (((1,), (1,)), ((), ())),
                           preferred_element_type=jnp.float32)          # (tm, tn)
    tmp = hsqc_ref[...] - gram                                          # (tm, tn)
    mask = tcol_ref[...] == trow_ref[...]                               # (tm, tn)
    ap_acc[...] = jnp.maximum(
        ap_acc[...], jnp.max(jnp.where(mask, tmp, -jnp.inf), axis=1, keepdims=True))
    an_acc[...] = jnp.minimum(
        an_acc[...], jnp.min(jnp.where(mask, jnp.inf, tmp), axis=1, keepdims=True))

    @pl.when(j == pl.num_programs(1) - 1)
    def _():
        eps = jnp.float32(_EPS)
        hsq_r = hsqr_ref[...]
        d_ap = jnp.sqrt(jnp.maximum(2.0 * (ap_acc[...] + hsq_r), eps))
        d_an = jnp.sqrt(jnp.maximum(2.0 * (an_acc[...] + hsq_r), eps))
        hinge_ref[...] = jnp.maximum(d_ap - d_an + m_ref[0, 0], 0.0)


# -----------------------------------------------------------------------------
# VMEM sizing helpers.
# -----------------------------------------------------------------------------
def _vmem_limit(est_bytes):
    # Never below the 32 MiB default scoped limit; capped at 60 MiB so the same
    # request is valid on v7x (64 MiB per TensorCore) as well as v5e/v6e.
    return int(min(60 * 2**20, max(32 * 2**20, int(1.25 * est_bytes))))


def _resident_vmem_estimate(n_pad, d, isz, tm, col_chunk):
    feat = 2 * n_pad * d * isz            # resident column operand (<= 2 buffers)
    rows = 2 * tm * d * isz               # double-buffered row block
    vecs = 4 * n_pad * 4                  # chunked half-norms + labels
    small = 12 * tm * 128 * 4             # (tm,1)-shaped blocks / hinge / slack
    inter = 8 * tm * col_chunk * 4        # live (tm, col_chunk) f32 temporaries
    return feat + rows + vecs + small + inter


def _streaming_vmem_estimate(d, isz, tm, tn):
    feat = 2 * (tm + tn) * d * isz
    small = 12 * tm * 128 * 4 + 64 * tn * 4
    inter = 8 * tm * tn * 4
    return feat + small + inter


# -----------------------------------------------------------------------------
# pallas_call wrappers.
# -----------------------------------------------------------------------------
def _triplet_hinge_resident(x, hsq, t, m, tm, col_chunk, vmem_limit):
    n_pad, d = x.shape
    n_chunks = n_pad // col_chunk
    cost = pl.CostEstimate(
        flops=int(2 * n_pad * n_pad * d),
        transcendentals=int(2 * n_pad),
        bytes_accessed=int(2 * n_pad * d * x.dtype.itemsize + 16 * n_pad + 8),
    )
    return pl.pallas_call(
        _make_resident_kernel(col_chunk),
        out_shape=jax.ShapeDtypeStruct((n_pad, 1), jnp.float32),
        grid=(n_pad // tm,),
        in_specs=[
            pl.BlockSpec(memory_space=pltpu.MemorySpace.SMEM),          # margin
            pl.BlockSpec((tm, d), lambda i: (i, 0)),                    # row block
            pl.BlockSpec((n_pad, d), lambda i: (0, 0)),                 # resident x
            pl.BlockSpec((tm, 1), lambda i: (i, 0)),                    # 0.5||x||^2 rows
            pl.BlockSpec((n_chunks, col_chunk), lambda i: (0, 0)),      # 0.5||x||^2 cols
            pl.BlockSpec((tm, 1), lambda i: (i, 0)),                    # row labels
            pl.BlockSpec((n_chunks, col_chunk), lambda i: (0, 0)),      # col labels
        ],
        out_specs=pl.BlockSpec((tm, 1), lambda i: (i, 0)),
        compiler_params=pltpu.CompilerParams(
            dimension_semantics=("parallel",),
            vmem_limit_bytes=vmem_limit),
        cost_estimate=cost,
    )(m, x, x, hsq.reshape(n_pad, 1), hsq.reshape(n_chunks, col_chunk),
      t.reshape(n_pad, 1), t.reshape(n_chunks, col_chunk))


def _triplet_hinge_streaming(x, hsq, t, m, tm, tn, vmem_limit):
    n_pad, d = x.shape
    grid = (n_pad // tm, n_pad // tn)
    cost = pl.CostEstimate(
        flops=int(2 * n_pad * n_pad * d),
        transcendentals=int(2 * n_pad),
        bytes_accessed=int((grid[0] + 1) * n_pad * d * x.dtype.itemsize
                           + 16 * n_pad + 8),
    )
    # NOTE (v5e): if this HBM-bound fallback is hot, raise tm and/or deepen the
    # column-block pipelining to cover DMA latency.
    return pl.pallas_call(
        _streaming_kernel,
        out_shape=jax.ShapeDtypeStruct((n_pad, 1), jnp.float32),
        grid=grid,
        in_specs=[
            pl.BlockSpec(memory_space=pltpu.MemorySpace.SMEM),          # margin
            pl.BlockSpec((tm, d), lambda i, j: (i, 0)),                 # row block
            pl.BlockSpec((tn, d), lambda i, j: (j, 0)),                 # col block
            pl.BlockSpec((tm, 1), lambda i, j: (i, 0)),                 # 0.5||x||^2 rows
            pl.BlockSpec((1, tn), lambda i, j: (0, j)),                 # 0.5||x||^2 cols
            pl.BlockSpec((tm, 1), lambda i, j: (i, 0)),                 # row labels
            pl.BlockSpec((1, tn), lambda i, j: (0, j)),                 # col labels
        ],
        out_specs=pl.BlockSpec((tm, 1), lambda i, j: (i, 0)),
        scratch_shapes=[pltpu.VMEM((tm, 1), jnp.float32),
                        pltpu.VMEM((tm, 1), jnp.float32)],
        compiler_params=pltpu.CompilerParams(
            dimension_semantics=("parallel", "arbitrary"),
            vmem_limit_bytes=vmem_limit),
        cost_estimate=cost,
    )(m, x, x, hsq.reshape(n_pad, 1), hsq.reshape(1, n_pad),
      t.reshape(n_pad, 1), t.reshape(1, n_pad))


def triplet_loss(inputs, targets, margin=0.3, *, block_rows=None, col_chunk=128,
                 resident_budget_bytes=40 * 2**20):
    """Triplet loss with hard mining (euclidean distance), forward pass.

    inputs: (N, D) float features (f32 / bf16); targets: (N,) int labels.
    """
    n, d = inputs.shape
    x = inputs
    if not jnp.issubdtype(x.dtype, jnp.floating):
        x = x.astype(jnp.float32)
    t = targets.astype(jnp.int32)

    if block_rows is None:
        # 256 row blocks raise MXU utilization on v6e/v7x; staying at 128 below
        # N=512 keeps grid[0] >= 2 so both v7x TensorCores get row blocks.
        block_rows = 256 if n >= 512 else 128
    tm = int(block_rows)
    col_chunk = int(col_chunk)

    # Pad N up to a common multiple of the row block and the column chunk.
    lcm = tm * col_chunk // math.gcd(tm, col_chunk)
    n_pad = -(-n // lcm) * lcm
    pad = n_pad - n

    # Hoisted half-norms: one fused XLA reduce, in f32, done once.
    half_sq = 0.5 * jnp.sum(jnp.square(x.astype(jnp.float32)), axis=1)   # (n,)

    if pad:
        x = jnp.pad(x, ((0, pad), (0, 0)))
        # Padded columns: huge half-norm -> never the hard negative; sentinel
        # label (min-1) -> never the hard positive.  Padded rows are sliced off
        # below, so no validity compares are needed in the hot loop.
        half_sq = jnp.concatenate(
            [half_sq, jnp.full((pad,), _BIG, dtype=jnp.float32)])
        sentinel = jnp.min(t) - 1
        t = jnp.concatenate([t, jnp.zeros((pad,), jnp.int32) + sentinel])

    m = jnp.full((1, 1), margin, dtype=jnp.float32)
    isz = x.dtype.itemsize

    res_est = _resident_vmem_estimate(n_pad, d, isz, tm, col_chunk)
    if res_est <= resident_budget_bytes:
        hinge = _triplet_hinge_resident(x, half_sq, t, m, tm, col_chunk,
                                        _vmem_limit(res_est))
    else:
        tn = 256 if n_pad % 256 == 0 else 128
        hinge = _triplet_hinge_streaming(
            x, half_sq, t, m, tm, tn,
            _vmem_limit(_streaming_vmem_estimate(d, isz, tm, tn)))

    # Mean over the real (unpadded) rows only.
    return jnp.mean(hinge[:n, 0])


# -----------------------------------------------------------------------------
# Pure-JAX reference mirroring the PyTorch forward (for sanity checking).
# -----------------------------------------------------------------------------
def _triplet_loss_ref(inputs, targets, margin=0.3):
    x = inputs.astype(jnp.float32)
    sq = jnp.sum(x * x, axis=1, keepdims=True)
    g = jnp.dot(x, x.T, precision=lax.Precision.HIGHEST)
    dist = jnp.sqrt(jnp.maximum(sq + sq.T - 2.0 * g, 1e-12))
    mask = targets[:, None] == targets[None, :]
    dist_ap = jnp.max(jnp.where(mask, dist, -jnp.inf), axis=1)
    dist_an = jnp.min(jnp.where(mask, jnp.inf, dist), axis=1)
    return jnp.mean(jnp.maximum(dist_ap - dist_an + margin, 0.0))


if __name__ == "__main__":
    key = jax.random.PRNGKey(0)
    k1, k2, k3 = jax.random.split(key, 3)

    # --- Tiny batch (pads 8 -> 128; resident path, grid = 1) ------------------
    n1, d1 = 8, 32
    x1 = jax.random.normal(k1, (n1, d1), dtype=jnp.float32)
    # bf16-representable values so the check is insensitive to the MXU's
    # bf16-pass precision for f32 matmuls.
    x1 = x1.astype(jnp.bfloat16).astype(jnp.float32)
    t1 = jnp.array([0, 0, 1, 1, 2, 2, 3, 3], dtype=jnp.int32)   # 4 ids x 2 samples
    loss1 = triplet_loss(x1, t1, margin=0.3)
    jax.block_until_ready(loss1)
    ref1 = _triplet_loss_ref(x1, t1, margin=0.3)
    assert jnp.allclose(loss1, ref1, rtol=1e-5, atol=1e-5), (loss1, ref1)

    # --- bf16 features, aligned N (resident path, 2 row blocks) ---------------
    n2, d2 = 256, 128
    x2 = jax.random.normal(k2, (n2, d2), dtype=jnp.float32).astype(jnp.bfloat16)
    t2 = jnp.arange(n2, dtype=jnp.int32) // 4                    # 64 ids x 4 samples
    loss2 = triplet_loss(x2, t2, margin=0.3)
    jax.block_until_ready(loss2)
    ref2 = _triplet_loss_ref(x2, t2, margin=0.3)
    assert jnp.allclose(loss2, ref2, rtol=1e-4, atol=1e-4), (loss2, ref2)

    # --- Unaligned N (200 -> padded 256): resident path AND the streaming
    # --- fallback (forced with a zero residency budget). ----------------------
    n3, d3 = 200, 64
    x3 = jax.random.normal(k3, (n3, d3), dtype=jnp.float32)
    x3 = x3.astype(jnp.bfloat16).astype(jnp.float32)
    t3 = jnp.arange(n3, dtype=jnp.int32) // 4                    # 50 ids x 4 samples
    ref3 = _triplet_loss_ref(x3, t3, margin=0.5)
    loss3a = triplet_loss(x3, t3, margin=0.5)
    loss3b = triplet_loss(x3, t3, margin=0.5, resident_budget_bytes=0)
    jax.block_until_ready((loss3a, loss3b))
    assert jnp.allclose(loss3a, ref3, rtol=1e-5, atol=1e-5), (loss3a, ref3)
    assert jnp.allclose(loss3b, ref3, rtol=1e-5, atol=1e-5), (loss3b, ref3)

    print("KERNEL_OK")
</pallas_src>

<mosaic_0001>
module attributes {stable_mosaic.version = 11 : i64} {
  func.func @kernel(%arg0: i32, %arg1: memref<1x1xf32, #tpu.memory_space<smem>>, %arg2: memref<128x32xf32, #tpu.memory_space<vmem>>, %arg3: memref<128x32xf32, #tpu.memory_space<vmem>>, %arg4: memref<128x1xf32, #tpu.memory_space<vmem>>, %arg5: memref<1x128xf32, #tpu.memory_space<vmem>>, %arg6: memref<128x1xi32, #tpu.memory_space<vmem>>, %arg7: memref<1x128xi32, #tpu.memory_space<vmem>>, %arg8: memref<128x1xf32, #tpu.memory_space<vmem>>) attributes {dimension_semantics = [#tpu.dimension_semantics<parallel>], iteration_bounds = array<i64: 1>, scalar_prefetch = 0 : i64, scratch_operands = 0 : i64, tpu.core_type = #tpu.core_type<tc>, window_params = [{transform_indices = @transform_0, window_bounds = array<i64: 1, 1>}, {transform_indices = @transform_1, window_bounds = array<i64: 128, 32>}, {pipeline_mode = #tpu.pipeline_mode<synchronous>, transform_indices = @transform_2, window_bounds = array<i64: 128, 32>}, {transform_indices = @transform_3, window_bounds = array<i64: 128, 1>}, {pipeline_mode = #tpu.pipeline_mode<synchronous>, transform_indices = @transform_4, window_bounds = array<i64: 1, 128>}, {transform_indices = @transform_5, window_bounds = array<i64: 128, 1>}, {pipeline_mode = #tpu.pipeline_mode<synchronous>, transform_indices = @transform_6, window_bounds = array<i64: 1, 128>}, {transform_indices = @transform_7, window_bounds = array<i64: 128, 1>}]} {
    %c0 = arith.constant 0 : index
    %c0_0 = arith.constant 0 : index
    %0 = vector.load %arg2[%c0, %c0_0] : memref<128x32xf32, #tpu.memory_space<vmem>>, vector<128x32xf32>
    %c0_1 = arith.constant 0 : index
    %c0_2 = arith.constant 0 : index
    %1 = vector.load %arg6[%c0_1, %c0_2] : memref<128x1xi32, #tpu.memory_space<vmem>>, vector<128x1xi32>
    %cst = arith.constant 0xFF800000 : f32
    %2 = vector.broadcast %cst : f32 to vector<128x1xf32>
    %cst_3 = arith.constant 0x7F800000 : f32
    %3 = vector.broadcast %cst_3 : f32 to vector<128x1xf32>
    %c0_i32 = arith.constant 0 : i32
    %c128_i32 = arith.constant 128 : i32
    %4 = arith.muli %c0_i32, %c128_i32 : i32
    %5 = tpu.assume_multiple %4, 128 : i32
    %6 = arith.index_cast %5 : i32 to index
    %c0_4 = arith.constant 0 : index
    %7 = vector.load %arg3[%6, %c0_4] : memref<128x32xf32, #tpu.memory_space<vmem>>, vector<128x32xf32>
    %cst_5 = arith.constant dense<0.000000e+00> : vector<128x128xf32>
    %8 = tpu.matmul %0, %7, %cst_5 {dimension_numbers = #tpu.dot_dimension_numbers<[1], [1], [0], [0], [0, 0, 1, 0], [], []>} : vector<128x32xf32>, vector<128x32xf32>, vector<128x128xf32> -> vector<128x128xf32>
    %9 = arith.index_cast %c0_i32 : i32 to index
    %c0_6 = arith.constant 0 : index
    %10 = vector.load %arg5[%9, %c0_6] : memref<1x128xf32, #tpu.memory_space<vmem>>, vector<1x128xf32>
    %11 = arith.index_cast %c0_i32 : i32 to index
    %c0_7 = arith.constant 0 : index
    %12 = vector.load %arg7[%11, %c0_7] : memref<1x128xi32, #tpu.memory_space<vmem>>, vector<1x128xi32>
    %13 = vector.broadcast %10 : vector<1x128xf32> to vector<128x128xf32>
    %14 = arith.subf %13, %8 : vector<128x128xf32>
    %15 = vector.broadcast %1 : vector<128x1xi32> to vector<128x128xi32>
    %16 = vector.broadcast %12 : vector<1x128xi32> to vector<128x128xi32>
    %17 = arith.cmpi eq, %15, %16 : vector<128x128xi32>
    %cst_8 = arith.constant 0xFF800000 : f32
    %18 = vector.broadcast %cst_8 : f32 to vector<128x128xf32>
    %19 = arith.select %17, %14, %18 : vector<128x128xi1>, vector<128x128xf32>
    %cst_9 = arith.constant dense<0xFF800000> : vector<128xf32>
    %20 = vector.multi_reduction <maximumf>, %19, %cst_9 [1] : vector<128x128xf32> to vector<128xf32>
    %21 = vector.shape_cast %20 : vector<128xf32> to vector<128x1xf32>
    %22 = arith.maximumf %2, %21 : vector<128x1xf32>
    %cst_10 = arith.constant 0x7F800000 : f32
    %23 = vector.broadcast %cst_10 : f32 to vector<128x128xf32>
    %24 = arith.select %17, %23, %14 : vector<128x128xi1>, vector<128x128xf32>
    %cst_11 = arith.constant dense<0x7F800000> : vector<128xf32>
    %25 = vector.multi_reduction <minimumf>, %24, %cst_11 [1] : vector<128x128xf32> to vector<128xf32>
    %26 = vector.shape_cast %25 : vector<128xf32> to vector<128x1xf32>
    %27 = arith.minimumf %3, %26 : vector<128x1xf32>
    %c1_i32 = arith.constant 1 : i32
    %c0_12 = arith.constant 0 : index
    %c0_13 = arith.constant 0 : index
    %28 = vector.load %arg4[%c0_12, %c0_13] : memref<128x1xf32, #tpu.memory_space<vmem>>, vector<128x1xf32>
    %29 = arith.addf %22, %28 : vector<128x1xf32>
    %cst_14 = arith.constant 2.000000e+00 : f32
    %30 = vector.broadcast %cst_14 : f32 to vector<128x1xf32>
    %31 = arith.mulf %30, %29 : vector<128x1xf32>
    %cst_15 = arith.constant 9.99999996E-13 : f32
    %32 = vector.broadcast %cst_15 : f32 to vector<128x1xf32>
    %33 = arith.maximumf %31, %32 : vector<128x1xf32>
    %34 = math.sqrt %33 : vector<128x1xf32>
    %35 = arith.addf %27, %28 : vector<128x1xf32>
    %cst_16 = arith.constant 2.000000e+00 : f32
    %36 = vector.broadcast %cst_16 : f32 to vector<128x1xf32>
    %37 = arith.mulf %36, %35 : vector<128x1xf32>
    %cst_17 = arith.constant 9.99999996E-13 : f32
    %38 = vector.broadcast %cst_17 : f32 to vector<128x1xf32>
    %39 = arith.maximumf %37, %38 : vector<128x1xf32>
    %40 = math.sqrt %39 : vector<128x1xf32>
    %41 = arith.subf %34, %40 : vector<128x1xf32>
    %c0_18 = arith.constant 0 : index
    %c0_19 = arith.constant 0 : index
    %42 = memref.load %arg1[%c0_18, %c0_19] : memref<1x1xf32, #tpu.memory_space<smem>>
    %43 = vector.broadcast %42 : f32 to vector<128x1xf32>
    %44 = arith.addf %41, %43 : vector<128x1xf32>
    %cst_20 = arith.constant 0.000000e+00 : f32
    %45 = vector.broadcast %cst_20 : f32 to vector<128x1xf32>
    %46 = arith.maximumf %44, %45 : vector<128x1xf32>
    %c0_21 = arith.constant 0 : index
    %c0_22 = arith.constant 0 : index
    %47 = vector.load %arg8[%c0_21, %c0_22] : memref<128x1xf32, #tpu.memory_space<vmem>>, vector<128x1xf32>
    tpu.vector_store %arg8[%c0_21, %c0_22], %46 {strides = array<i32>} : memref<128x1xf32, #tpu.memory_space<vmem>>, vector<128x1xf32>,
    return
  }
  func.func @transform_0(%arg0: i32) -> (i32, i32) {
    %c0_i32 = arith.constant 0 : i32
    %c0_i32_0 = arith.constant 0 : i32
    %c0_i32_1 = arith.constant 0 : i32
    return %c0_i32, %c0_i32_0 : i32, i32
  }
  func.func @transform_1(%arg0: i32) -> (i32, i32) {
    %c0_i32 = arith.constant 0 : i32
    %c0_i32_0 = arith.constant 0 : i32
    return %arg0, %c0_i32 : i32, i32
  }
  func.func @transform_2(%arg0: i32) -> (i32, i32) {
    %c0_i32 = arith.constant 0 : i32
    %c0_i32_0 = arith.constant 0 : i32
    %c0_i32_1 = arith.constant 0 : i32
    return %c0_i32, %c0_i32_0 : i32, i32
  }
  func.func @transform_3(%arg0: i32) -> (i32, i32) {
    %c0_i32 = arith.constant 0 : i32
    %c0_i32_0 = arith.constant 0 : i32
    return %arg0, %c0_i32 : i32, i32
  }
  func.func @transform_4(%arg0: i32) -> (i32, i32) {
    %c0_i32 = arith.constant 0 : i32
    %c0_i32_0 = arith.constant 0 : i32
    %c0_i32_1 = arith.constant 0 : i32
    return %c0_i32, %c0_i32_0 : i32, i32
  }
  func.func @transform_5(%arg0: i32) -> (i32, i32) {
    %c0_i32 = arith.constant 0 : i32
    %c0_i32_0 = arith.constant 0 : i32
    return %arg0, %c0_i32 : i32, i32
  }
  func.func @transform_6(%arg0: i32) -> (i32, i32) {
    %c0_i32 = arith.constant 0 : i32
    %c0_i32_0 = arith.constant 0 : i32
    %c0_i32_1 = arith.constant 0 : i32
    return %c0_i32, %c0_i32_0 : i32, i32
  }
  func.func @transform_7(%arg0: i32) -> (i32, i32) {
    %c0_i32 = arith.constant 0 : i32
    %c0_i32_0 = arith.constant 0 : i32
    return %arg0, %c0_i32 : i32, i32
  }
}

</mosaic_0001>

<bundles_post_ra>
// kernel: tpu_custom_call.1
= control target key start
LH: loop header
LB: loop body
LE: loop exit
PB: predicated region body
PF: predicated region fallthrough
CT: control target
= control target key end

     0   :  { %vm75_vm0 = vcmask 261120   ;;  %v1165_v3 = vmov 0   ;;  %s2018_s2 = inlined_call_operand.vmem [shape: f32[128,32], index: 2, kind: input, shape index: {}]   ;;  %s2019_s1 = inlined_call_operand.vmem [shape: f32[128,32], index: 1, kind: input, shape index: {}]   ;;  %s2020_s5 = inlined_call_operand.vmem [shape: s32[128,1], index: 5, kind: input, shape index: {}]   ;;  %s2021_s4 = inlined_call_operand.vmem [shape: f32[1,128], index: 4, kind: input, shape index: {}]   ;;  %s2022_s6 = inlined_call_operand.vmem [shape: s32[1,128], index: 6, kind: input, shape index: {}]   ;;  %s2023_s3 = inlined_call_operand.vmem [shape: f32[128,1], index: 3, kind: input, shape index: {}]   ;;  %s2024_s0 = inlined_call_operand.<no memory space> [shape: f32[1,1], index: 0, kind: input, shape index: {}]   ;;  %s2025_s7 = inlined_call_operand.vmem [shape: f32[128,1], index: 7, kind: output, shape index: {}]  }
   0x1   :  { %v59_v0 = vld [vmem:[%s2018_s2] sm:$0xff]  ;;  %v60_v1 = vld [vmem:[%s2018_s2 + $0x8] sm:$0xff]  ;;  %vm1214_vm1 = vmpackc.low %vm75_vm0, %vm75_vm0  ;;  %1100 = vset.pattern.permute.xlu1 %v1165_v3  ;;  %1099 = vset.pattern.permute.xlu0 %v1165_v3 }
   0x2   :  { %v1034_v4 = vpack.c.bf16 %v60_v1, %v59_v0  ;;  %v61_v5 = vld [vmem:[%s2018_s2 + $0x10] sm:$0xff]  ;;  %v62_v6 = vld [vmem:[%s2018_s2 + $0x18] sm:$0xff]  ;;  %v27_v8 = vld [vmem:[%s2019_s1] sm:$0xff] }
   0x3   :  { %v1040_v7 = vpack.c.bf16 %v62_v6, %v61_v5  ;;  %v63_v9 = vld [vmem:[%s2018_s2 + $0x20] sm:$0xff]  ;;  %v64_v10 = vld [vmem:[%s2018_s2 + $0x28] sm:$0xff]  ;;  %1010 = vmatprep.mubr.msk.f32.mxu0 %vm75_vm0, %v27_v8  ;;  %v45_v13 = vld [vmem:[%s2020_s5 + $0x10] sm:$0xff] }
   0x4   :  { %1036 = vmatprep.subr.msk.bf16.mxu0 %vm1214_vm1, %v1034_v4  ;;  %1082 = vmatprep.subr.msk.bf16.mxu1 %vm1214_vm1, %v1034_v4  ;;  %v35_v11 = vld [vmem:[%s2019_s1 + $0x40] sm:$0xff]  ;;  %v1046_v12 = vpack.c.bf16 %v64_v10, %v63_v9  ;;  %v65_v15 = vld [vmem:[%s2018_s2 + $0x30] sm:$0xff]  ;;  %v66_v16 = vld [vmem:[%s2018_s2 + $0x38] sm:$0xff] }
   0x5   :  { %1039 = vmatpush3.bf16.xpose.msk.msra.mxu0 %vm1214_vm1, %v1034_v4  ;;  %1090 = vmatpush3.bf16.xpose.msk.msra.mxu1 %vm1214_vm1, %v1034_v4  ;;  %v43_v14 = vld [vmem:[%s2020_s5] sm:$0xff]  ;;  %v46_v17 = vld [vmem:[%s2020_s5 + $0x18] sm:$0xff]  ;;  %v44_v18 = vld [vmem:[%s2020_s5 + $0x8] sm:$0xff]  ;;  %v1052_v19 = vpack.c.bf16 %v66_v16, %v65_v15 }
   0x6   :  { %1042 = vmatprep.subr.msk.bf16.mxu0 %vm1214_vm1, %v1040_v7  ;;  %1083 = vmatprep.subr.msk.bf16.mxu1 %vm1214_vm1, %v1040_v7  ;;  %v48_v20 = vld [vmem:[%s2020_s5 + $0x28] sm:$0xff]  ;;  %v47_v21 = vld [vmem:[%s2020_s5 + $0x20] sm:$0xff]  ;;  %v50_v24 = vld [vmem:[%s2020_s5 + $0x38] sm:$0xff] }
   0x7   :  { %1022 = vmatprep.mubr.msk.f32.mxu1 %vm75_vm0, %v35_v11  ;;  %348 = vperm.xlu1 %1100, %v45_v13   ;;  %v67_v22 = vld [vmem:[%s2018_s2 + $0x40] sm:$0xff]  ;;  %v68_v23 = vld [vmem:[%s2018_s2 + $0x48] sm:$0xff]  ;;  %v49_v25 = vld [vmem:[%s2020_s5 + $0x30] sm:$0xff] }
   0x8   :  { %342 = vperm.xlu0 %1099, %v43_v14   ;;  %v1058_v26 = vpack.c.bf16 %v68_v23, %v67_v22  ;;  %v52_v27 = vld [vmem:[%s2020_s5 + $0x48] sm:$0xff]  ;;  %v51_v28 = vld [vmem:[%s2020_s5 + $0x40] sm:$0xff]  ;;  %v69_v29 = vld [vmem:[%s2018_s2 + $0x50] sm:$0xff] }
   0x9   :  { %v70_v30 = vld [vmem:[%s2018_s2 + $0x58] sm:$0xff]  ;;  %v53_v32 = vld [vmem:[%s2020_s5 + $0x50] sm:$0xff]  ;;  %v56_v34 = vld [vmem:[%s2020_s5 + $0x68] sm:$0xff] }
   0xa   :  { %v54_v31 = vld [vmem:[%s2020_s5 + $0x58] sm:$0xff]  ;;  %v1064_v33 = vpack.c.bf16 %v70_v30, %v69_v29  ;;  %v55_v35 = vld [vmem:[%s2020_s5 + $0x60] sm:$0xff]  ;;  %v72_v37 = vld [vmem:[%s2018_s2 + $0x68] sm:$0xff] }
   0xb   :  { %351 = vperm.xlu1 %1100, %v46_v17   ;;  %v71_v36 = vld [vmem:[%s2018_s2 + $0x60] sm:$0xff]  ;;  %v58_v38 = vld [vmem:[%s2020_s5 + $0x78] sm:$0xff]  ;;  %v57_v39 = vld [vmem:[%s2020_s5 + $0x70] sm:$0xff] }
   0xc   :  { %345 = vperm.xlu0 %1099, %v44_v18   ;;  %v1070_v40 = vpack.c.bf16 %v72_v37, %v71_v36  ;;  %v73_v41 = vld [vmem:[%s2018_s2 + $0x70] sm:$0xff]  ;;  %v74_v42 = vld [vmem:[%s2018_s2 + $0x78] sm:$0xff]  ;;  %v28_v44 = vld [vmem:[%s2019_s1 + $0x8] sm:$0xff] }
   0xd   :  { %1045 = vmatpush3.bf16.xpose.msk.msra.mxu0 %vm1214_vm1, %v1040_v7  ;;  %1091 = vmatpush3.bf16.xpose.msk.msra.mxu1 %vm1214_vm1, %v1040_v7  ;;  %v1076_v43 = vpack.c.bf16 %v74_v42, %v73_v41  ;;  %v36_v45 = vld [vmem:[%s2019_s1 + $0x48] sm:$0xff]  ;;  %v29_v46 = vld [vmem:[%s2019_s1 + $0x10] sm:$0xff]  ;;  %v30_v48 = vld [vmem:[%s2019_s1 + $0x18] sm:$0xff] }
   0xe   :  { %1048 = vmatprep.subr.msk.bf16.mxu0 %vm1214_vm1, %v1046_v12  ;;  %1084 = vmatprep.subr.msk.bf16.mxu1 %vm1214_vm1, %v1046_v12  ;;  %v37_v47 = vld [vmem:[%s2019_s1 + $0x50] sm:$0xff]  ;;  %v38_v49 = vld [vmem:[%s2019_s1 + $0x58] sm:$0xff]  ;;  %v31_v50 = vld [vmem:[%s2019_s1 + $0x20] sm:$0xff] }
   0xf   :  { %357 = vperm.xlu1 %1100, %v48_v20   ;;  %v39_v51 = vld [vmem:[%s2019_s1 + $0x60] sm:$0xff]  ;;  %v32_v52 = vld [vmem:[%s2019_s1 + $0x28] sm:$0xff]  ;;  %v33_v54 = vld [vmem:[%s2019_s1 + $0x30] sm:$0xff] }
  0x10   :  { %354 = vperm.xlu0 %1099, %v47_v21   ;;  %v40_v53 = vld [vmem:[%s2019_s1 + $0x68] sm:$0xff]  ;;  %v41_v55 = vld [vmem:[%s2019_s1 + $0x70] sm:$0xff]  ;;  %v34_v56 = vld [vmem:[%s2019_s1 + $0x38] sm:$0xff] }
  0x11   :  { %v42_v57 = vld [vmem:[%s2019_s1 + $0x78] sm:$0xff]  ;;  %v1451_v2 = vld [vmem:[%s2021_s4] ss:$0 sm:$0xff] }
  0x12   :  { %v1456_v3 = vld [vmem:[%s2022_s6] ss:$0 sm:$0xff] }
  0x13   :  { %363 = vperm.xlu1 %1100, %v50_v24  }
  0x14   :  { %360 = vperm.xlu0 %1099, %v49_v25  }
  0x15   :  { %1051 = vmatpush3.bf16.xpose.msk.msra.mxu0 %vm1214_vm1, %v1046_v12  ;;  %1092 = vmatpush3.bf16.xpose.msk.msra.mxu1 %vm1214_vm1, %v1046_v12 }
  0x16   :  { %1054 = vmatprep.subr.msk.bf16.mxu0 %vm1214_vm1, %v1052_v19  ;;  %1085 = vmatprep.subr.msk.bf16.mxu1 %vm1214_vm1, %v1052_v19 }
  0x17   :  { %369 = vperm.xlu1 %1100, %v52_v27  }
  0x18   :  { %366 = vperm.xlu0 %1099, %v51_v28  }
  0x1b   :  { %375 = vperm.xlu1 %1100, %v54_v31  }
  0x1c   :  { %372 = vperm.xlu0 %1099, %v53_v32  }
  0x1d   :  { %1057 = vmatpush3.bf16.xpose.msk.msra.mxu0 %vm1214_vm1, %v1052_v19  ;;  %1093 = vmatpush3.bf16.xpose.msk.msra.mxu1 %vm1214_vm1, %v1052_v19 }
  0x1e   :  { %1060 = vmatprep.subr.msk.bf16.mxu0 %vm1214_vm1, %v1058_v26  ;;  %1086 = vmatprep.subr.msk.bf16.mxu1 %vm1214_vm1, %v1058_v26 }
  0x1f   :  { %381 = vperm.xlu1 %1100, %v56_v34  }
  0x20   :  { %378 = vperm.xlu0 %1099, %v55_v35  }
  0x23   :  { %387 = vperm.xlu1 %1100, %v58_v38  }
  0x24   :  { %384 = vperm.xlu0 %1099, %v57_v39  }
  0x25   :  { %1063 = vmatpush3.bf16.xpose.msk.msra.mxu0 %vm1214_vm1, %v1058_v26  ;;  %1094 = vmatpush3.bf16.xpose.msk.msra.mxu1 %vm1214_vm1, %v1058_v26 }
  0x26   :  { %1066 = vmatprep.subr.msk.bf16.mxu0 %vm1214_vm1, %v1064_v33  ;;  %1087 = vmatprep.subr.msk.bf16.mxu1 %vm1214_vm1, %v1064_v33 }
  0x2d   :  { %1069 = vmatpush3.bf16.xpose.msk.msra.mxu0 %vm1214_vm1, %v1064_v33  ;;  %1095 = vmatpush3.bf16.xpose.msk.msra.mxu1 %vm1214_vm1, %v1064_v33 }
  0x2e   :  { %1072 = vmatprep.subr.msk.bf16.mxu0 %vm1214_vm1, %v1070_v40  ;;  %1088 = vmatprep.subr.msk.bf16.mxu1 %vm1214_vm1, %v1070_v40 }
  0x35   :  { %1075 = vmatpush3.bf16.xpose.msk.msra.mxu0 %vm1214_vm1, %v1070_v40  ;;  %1096 = vmatpush3.bf16.xpose.msk.msra.mxu1 %vm1214_vm1, %v1070_v40 }
  0x36   :  { %1078 = vmatprep.subr.msk.bf16.mxu0 %vm1214_vm1, %v1076_v43  ;;  %1089 = vmatprep.subr.msk.bf16.mxu1 %vm1214_vm1, %v1076_v43 }
  0x3d   :  { %1081 = vmatpush3.bf16.xpose.msk.msra.mxu0 %vm1214_vm1, %v1076_v43  ;;  %1097 = vmatpush3.bf16.xpose.msk.msra.mxu1 %vm1214_vm1, %v1076_v43 }
  0x44   :  { %1011 = vmatmul.mubr.msk.f32.vlgmr.msra.gmra.mrb[0].mxu0 %vm75_vm0, %v28_v44  ;;  %1023 = vmatmul.mubr.msk.f32.vlgmr.msra.gmra.mrb[0].mxu1 %vm75_vm0, %v36_v45 }
  0x45   :  { %1013 = vmatprep.mubr.msk.f32.mxu0 %vm75_vm0, %v29_v46  ;;  %1025 = vmatprep.mubr.msk.f32.mxu1 %vm75_vm0, %v37_v47 }
  0x48   :  { %1014 = vmatmul.mubr.msk.f32.gmra.mrb[2].mxu0 %vm75_vm0, %v30_v48  ;;  %1026 = vmatmul.mubr.msk.f32.gmra.mrb[2].mxu1 %vm75_vm0, %v38_v49 }
  0x49   :  { %1016 = vmatprep.mubr.msk.f32.mxu0 %vm75_vm0, %v31_v50  ;;  %1028 = vmatprep.mubr.msk.f32.mxu1 %vm75_vm0, %v39_v51 }
  0x4c   :  { %1017 = vmatmul.mubr.msk.f32.gmra.mrb[4].mxu0 %vm75_vm0, %v32_v52  ;;  %1029 = vmatmul.mubr.msk.f32.gmra.mrb[4].mxu1 %vm75_vm0, %v40_v53 }
  0x4d   :  { %1019 = vmatprep.mubr.msk.f32.mxu0 %vm75_vm0, %v33_v54  ;;  %1031 = vmatprep.mubr.msk.f32.mxu1 %vm75_vm0, %v41_v55 }
  0x50   :  { %1020 = vmatmul.mubr.msk.f32.gmra.mrb[6].mxu0 %vm75_vm0, %v34_v56  ;;  %1032 = vmatmul.mubr.msk.f32.gmra.mrb[6].mxu1 %vm75_vm0, %v42_v57 }
  0x86   :  { %v1436_v58 = vpop.permute.xlu1 %348 }
  0x87   :  { %v343_v59 = vpop.permute.xlu0 %342  ;;  %vm395_vm8 = vcmp.eq.s32.totalorder %v1436_v58, %v1456_v3 }
  0x88   :  { %vm393_vm5 = vcmp.eq.s32.totalorder %v343_v59, %v1456_v3 }
  0x8a   :  { %v1438_v60 = vpop.permute.xlu1 %351 }
  0x8b   :  { %v346_v61 = vpop.permute.xlu0 %345  ;;  %vm396_vm6 = vcmp.eq.s32.totalorder %v1438_v60, %v1456_v3 }
  0x8c   :  { %vm394_vm3 = vcmp.eq.s32.totalorder %v346_v61, %v1456_v3 }
  0x8e   :  { %v1440_v62 = vpop.permute.xlu1 %357 }
  0x8f   :  { %v1442_v63 = vpop.permute.xlu0 %354  ;;  %vm398_vm12 = vcmp.eq.s32.totalorder %v1440_v62, %v1456_v3 }
  0x90   :  { %vm397_vm10 = vcmp.eq.s32.totalorder %v1442_v63, %v1456_v3 }
  0x92   :  { %v1444_v0 = vpop.permute.xlu1 %363 }
  0x93   :  { %v1446_v1 = vpop.permute.xlu0 %360  ;;  %vm400_vm0 = vcmp.eq.s32.totalorder %v1444_v0, %v1456_v3 }
  0x94   :  { %vm399_vm14 = vcmp.eq.s32.totalorder %v1446_v1, %v1456_v3  ;;  %v506_v1 = vld [vmem:[%s2023_s3 + $0x8] sm:$0xff] }
  0x96   :  { %v370_v4 = vpop.permute.xlu1 %369 }
  0x97   :  { %vm402_vm2 = vcmp.eq.s32.totalorder %v370_v4, %v1456_v3  ;;  %v367_v11 = vpop.permute.xlu0 %366 }
  0x98   :  { %vm401_vm4 = vcmp.eq.s32.totalorder %v367_v11, %v1456_v3 }
  0x9a   :  { %v376_v41 = vpop.permute.xlu1 %375 }
  0x9b   :  { %v373_v36 = vpop.permute.xlu0 %372  ;;  %vm404_vm9 = vcmp.eq.s32.totalorder %v376_v41, %v1456_v3 }
  0x9c   :  { %vm403_vm7 = vcmp.eq.s32.totalorder %v373_v36, %v1456_v3 }
  0x9e   :  { %v382_v57 = vpop.permute.xlu1 %381 }
  0x9f   :  { %v379_v50 = vpop.permute.xlu0 %378  ;;  %vm406_vm13 = vcmp.eq.s32.totalorder %v382_v57, %v1456_v3 }
  0xa0   :  { %vm405_vm11 = vcmp.eq.s32.totalorder %v379_v50, %v1456_v3 }
  0xa2   :  { %v388_v62 = vpop.permute.xlu1 %387 }
  0xa3   :  { %v385_v61 = vpop.permute.xlu0 %384  ;;  %vm408_vm1 = vcmp.eq.s32.totalorder %v388_v62, %v1456_v3 }
  0xa4   :  { %vm407_vm15 = vcmp.eq.s32.totalorder %v385_v61, %v1456_v3 }
 0x117   :  { %v1012_v5 = vpop.f32.mrb[0].mxu0  ;;  %v1024_v6 = vpop.f32.mrb[0].mxu1 }
 0x118   :  { %v326_v7 = vsub.f32 %v1451_v2, %v1012_v5  ;;  %v334_v8 = vsub.f32 %v1451_v2, %v1024_v6  ;;  %v238_v9 = vpop.f32.mrb[1].mxu0  ;;  %v278_v10 = vpop.f32.mrb[1].mxu1 }
 0x119   :  { %v333_v12 = vsub.f32 %v1451_v2, %v278_v10  ;;  %v325_v19 = vsub.f32 %v1451_v2, %v238_v9 }
 0x11a   :  { %v418_v13 = vsel %vm402_vm2, %v334_v8, -inf  ;;  %v410_v14 = vsel %vm394_vm3, %v326_v7, -inf  ;;  %v458_v20 = vsel %vm394_vm3, inf, %v326_v7  ;;  %v466_v26 = vsel %vm402_vm2, inf, %v334_v8 }
 0x11b   :  { %443 = vmax.xlane.f32.xlu0 %v418_v13  ;;  %v1027_v15 = vpop.f32.mrb[2].mxu1  ;;  %427 = vmax.xlane.f32.xlu1 %v410_v14  ;;  %v1015_v16 = vpop.f32.mrb[2].mxu0  ;;  %v417_v21 = vsel %vm401_vm4, %v333_v12, -inf  ;;  %v457_v27 = vsel %vm393_vm5, inf, %v325_v19  ;;  %v465_v34 = vsel %vm401_vm4, inf, %v333_v12  ;;  %v409_v35 = vsel %vm393_vm5, %v325_v19, -inf }
 0x11c   :  { %v248_v17 = vpop.f32.mrb[3].mxu0  ;;  %v288_v18 = vpop.f32.mrb[3].mxu1  ;;  %v328_v32 = vsub.f32 %v1451_v2, %v1015_v16  ;;  %v336_v37 = vsub.f32 %v1451_v2, %v1027_v15 }
 0x11d   :  { %v335_v33 = vsub.f32 %v1451_v2, %v288_v18  ;;  %v327_v38 = vsub.f32 %v1451_v2, %v248_v17  ;;  %v513_v18 = vld [vmem:[%s2023_s3 + $0x40] sm:$0xff] }
 0x11e   :  { %v412_v40 = vsel %vm396_vm6, %v328_v32, -inf  ;;  %v420_v42 = vsel %vm404_vm9, %v336_v37, -inf  ;;  %v460_v45 = vsel %vm396_vm6, inf, %v328_v32  ;;  %v468_v48 = vsel %vm404_vm9, inf, %v336_v37 }
 0x11f   :  { %v1030_v22 = vpop.f32.mrb[4].mxu1  ;;  %475 = vmin.xlane.f32.xlu0 %v458_v20  ;;  %441 = vmax.xlane.f32.xlu1 %v417_v21  ;;  %v1018_v23 = vpop.f32.mrb[4].mxu0  ;;  %v419_v39 = vsel %vm403_vm7, %v335_v33, -inf  ;;  %v459_v43 = vsel %vm395_vm8, inf, %v327_v38  ;;  %v467_v46 = vsel %vm403_vm7, inf, %v335_v33  ;;  %v411_v52 = vsel %vm395_vm8, %v327_v38, -inf }
 0x120   :  { %v258_v24 = vpop.f32.mrb[5].mxu0  ;;  %v298_v25 = vpop.f32.mrb[5].mxu1  ;;  %v330_v51 = vsub.f32 %v1451_v2, %v1018_v23  ;;  %v338_v54 = vsub.f32 %v1451_v2, %v1030_v22  ;;  %vm891_vm7 = vcmask 7168  }
 0x121   :  { %v329_v44 = vsub.f32 %v1451_v2, %v258_v24  ;;  %v337_v47 = vsub.f32 %v1451_v2, %v298_v25 }
 0x122   :  { %v414_v55 = vsel %vm398_vm12, %v330_v51, -inf  ;;  %v422_v59 = vsel %vm406_vm13, %v338_v54, -inf  ;;  %v462_v4 = vsel %vm398_vm12, inf, %v330_v51  ;;  %v470_v7 = vsel %vm406_vm13, inf, %v338_v54 }
 0x123   :  { %v1472_v28 = vpop.f32.mrb[6].mxu1  ;;  %491 = vmin.xlane.f32.xlu0 %v466_v26  ;;  %473 = vmin.xlane.f32.xlu1 %v457_v27  ;;  %v1474_v29 = vpop.f32.mrb[6].mxu0  ;;  %v413_v49 = vsel %vm397_vm10, %v329_v44, -inf  ;;  %v421_v53 = vsel %vm405_vm11, %v337_v47, -inf  ;;  %v461_v56 = vsel %vm397_vm10, inf, %v329_v44  ;;  %v469_v60 = vsel %vm405_vm11, inf, %v337_v47 }
 0x124   :  { %v268_v30 = vpop.f32.mrb[7].mxu0  ;;  %v308_v31 = vpop.f32.mrb[7].mxu1  ;;  %v332_v6 = vsub.f32 %v1451_v2, %v1474_v29  ;;  %v340_v9 = vsub.f32 %v1451_v2, %v1472_v28  ;;  %v505_v27 = vld [vmem:[%s2023_s3] sm:$0xff]  ;;  %v508_v47 = vld [vmem:[%s2023_s3 + $0x18] sm:$0xff] }
 0x125   :  { %v331_v58 = vsub.f32 %v1451_v2, %v268_v30  ;;  %v339_v63 = vsub.f32 %v1451_v2, %v308_v31  ;;  %v514_v2 = vld [vmem:[%s2023_s3 + $0x48] sm:$0xff] }
 0x126   :  { %v416_v10 = vsel %vm400_vm0, %v332_v6, -inf  ;;  %v424_v12 = vsel %vm408_vm1, %v340_v9, -inf  ;;  %v464_v14 = vsel %vm400_vm0, inf, %v332_v6  ;;  %v472_v0 = vsel %vm408_vm1, inf, %v340_v9 }
 0x127   :  { %489 = vmin.xlane.f32.xlu1 %v465_v34  ;;  %425 = vmax.xlane.f32.xlu0 %v409_v35  ;;  %v415_v5 = vsel %vm399_vm14, %v331_v58, -inf  ;;  %v423_v8 = vsel %vm407_vm15, %v339_v63, -inf  ;;  %v463_v11 = vsel %vm399_vm14, inf, %v331_v58  ;;  %v471_v13 = vsel %vm407_vm15, inf, %v339_v63 }
 0x12b   :  { %445 = vmax.xlane.f32.xlu1 %v419_v39  ;;  %431 = vmax.xlane.f32.xlu0 %v412_v40 }
 0x12f   :  { %447 = vmax.xlane.f32.xlu0 %v420_v42  ;;  %477 = vmin.xlane.f32.xlu1 %v459_v43 }
 0x133   :  { %479 = vmin.xlane.f32.xlu0 %v460_v45  ;;  %493 = vmin.xlane.f32.xlu1 %v467_v46  ;;  %v1580_v46 = vld [vmem:[%s2023_s3 + $0x50] sm:$0xff] }
 0x137   :  { %495 = vmin.xlane.f32.xlu0 %v468_v48  ;;  %433 = vmax.xlane.f32.xlu1 %v413_v49  ;;  %v1590_v49 = vstv %s2024_s0 }
 0x13b   :  { %429 = vmax.xlane.f32.xlu0 %v411_v52  ;;  %449 = vmax.xlane.f32.xlu1 %v421_v53 }
 0x13f   :  { %435 = vmax.xlane.f32.xlu0 %v414_v55  ;;  %481 = vmin.xlane.f32.xlu1 %v461_v56 }
 0x143   :  { %451 = vmax.xlane.f32.xlu0 %v422_v59  ;;  %497 = vmin.xlane.f32.xlu1 %v469_v60 }
 0x147   :  { %483 = vmin.xlane.f32.xlu0 %v462_v4  ;;  %437 = vmax.xlane.f32.xlu1 %v415_v5 }
 0x14b   :  { %499 = vmin.xlane.f32.xlu0 %v470_v7  ;;  %453 = vmax.xlane.f32.xlu1 %v423_v8 }
 0x14f   :  { %439 = vmax.xlane.f32.xlu0 %v416_v10  ;;  %485 = vmin.xlane.f32.xlu1 %v463_v11  ;;  %v1615_v10 = vld [vmem:[%s2023_s3 + $0x58] sm:$0xff] }
 0x153   :  { %455 = vmax.xlane.f32.xlu0 %v424_v12  ;;  %501 = vmin.xlane.f32.xlu1 %v471_v13 }
 0x157   :  { %487 = vmin.xlane.f32.xlu0 %v464_v14 }
 0x15b   :  { %503 = vmin.xlane.f32.xlu0 %v472_v0 }
 0x1a8   :  { %v444_v15 = vpop.xlane.xlu0 %443  ;;  %v428_v16 = vpop.xlane.xlu1 %427 }
 0x1a9   :  { %v530_v17 = vadd.f32 %v514_v2, %v444_v15  ;;  %v522_v3 = vadd.f32 %v506_v1, %v428_v16  ;;  %v1635_v15 = vld [vmem:[%s2023_s3 + $0x10] sm:$0xff] }
 0x1ab   :  { %v546_v19 = vmul.f32 2.0, %v530_v17  ;;  %v538_v20 = vmul.f32 2.0, %v522_v3 }
 0x1ac   :  { %v476_v21 = vpop.xlane.xlu0 %475  ;;  %v442_v22 = vpop.xlane.xlu1 %441 }
 0x1ad   :  { %v1557_v23 = vmax.f32 %v538_v20, 1e-12  ;;  %v682_v24 = vadd.f32 %v506_v1, %v476_v21  ;;  %v529_v25 = vadd.f32 %v513_v18, %v442_v22  ;;  %v1559_v26 = vmax.f32 %v546_v19, 1e-12 }
 0x1af   :  { %1101 = vrsqrt.f32 %v1557_v23  ;;  %v698_v30 = vmul.f32 2.0, %v682_v24  ;;  %v545_v31 = vmul.f32 2.0, %v529_v25  ;;  %vm634_vm2 = vcmp.eq.f32.partialorder %v1559_v26, inf }
 0x1b0   :  { %v492_v28 = vpop.xlane.xlu0 %491  ;;  %v474_v29 = vpop.xlane.xlu1 %473  ;;  %1103 = vrsqrt.f32 %v1559_v26  ;;  %v637_v53 = vand.u32 2147483648, %v1559_v26  ;;  %vm636_vm3 = vcmp.eq.f32.partialorder %v1559_v26, 0.0  ;;  %vm578_vm4 = vcmp.eq.f32.partialorder %v1557_v23, inf }
 0x1b1   :  { %v690_v32 = vadd.f32 %v514_v2, %v492_v28  ;;  %v681_v33 = vadd.f32 %v505_v27, %v474_v29  ;;  %v1566_v34 = vmax.f32 %v698_v30, 1e-12  ;;  %v1568_v35 = vmax.f32 %v545_v31, 1e-12 }
 0x1b2   :  { %vm580_vm5 = vcmp.eq.f32.partialorder %v1557_v23, 0.0  ;;  %v581_v61 = vand.u32 2147483648, %v1557_v23 }
 0x1b3   :  { %v706_v36 = vmul.f32 2.0, %v690_v32  ;;  %v697_v37 = vmul.f32 2.0, %v681_v33  ;;  %1105 = vrsqrt.f32 %v1566_v34  ;;  %vm738_vm6 = vcmp.eq.f32.partialorder %v1566_v34, inf }
 0x1b4   :  { %v490_v38 = vpop.xlane.xlu1 %489  ;;  %v426_v39 = vpop.xlane.xlu0 %425  ;;  %1107 = vrsqrt.f32 %v1568_v35  ;;  %vm740_vm8 = vcmp.eq.f32.partialorder %v1566_v34, 0.0  ;;  %v741_v7 = vand.u32 2147483648, %v1566_v34  ;;  %vm627_vm9 = vcmp.eq.f32.partialorder %v1568_v35, inf }
 0x1b5   :  { %v1572_v40 = vmax.f32 %v706_v36, 1e-12  ;;  %v1574_v41 = vmax.f32 %v697_v37, 1e-12  ;;  %v689_v42 = vadd.f32 %v513_v18, %v490_v38  ;;  %v521_v43 = vadd.f32 %v505_v27, %v426_v39 }
 0x1b6   :  { %v630_v13 = vand.u32 2147483648, %v1568_v35  ;;  %vm629_vm12 = vcmp.eq.f32.partialorder %v1568_v35, 0.0 }
 0x1b7   :  { %1109 = vrsqrt.f32 %v1572_v40  ;;  %v705_v50 = vmul.f32 2.0, %v689_v42  ;;  %v537_v51 = vmul.f32 2.0, %v521_v43  ;;  %vm794_vm10 = vcmp.eq.f32.partialorder %v1572_v40, inf }
 0x1b8   :  { %v446_v44 = vpop.xlane.xlu1 %445  ;;  %v432_v45 = vpop.xlane.xlu0 %431  ;;  %1111 = vrsqrt.f32 %v1574_v41  ;;  %vm796_vm11 = vcmp.eq.f32.partialorder %v1572_v40, 0.0  ;;  %v797_v2 = vand.u32 2147483648, %v1572_v40  ;;  %vm731_vm13 = vcmp.eq.f32.partialorder %v1574_v41, inf }
 0x1b9   :  { %v1102_v48 = vpop.eup %1101  ;;  %v531_v55 = vadd.f32 %v1580_v46, %v446_v44  ;;  %v524_v56 = vadd.f32 %v508_v47, %v432_v45  ;;  %v1598_v59 = vmax.f32 %v705_v50, 1e-12  ;;  %v1600_v60 = vmax.f32 %v537_v51, 1e-12 }
 0x1ba   :  { %v1104_v52 = vpop.eup %1103  ;;  %v577_v54 = vmul.f32 %v1102_v48, %v1557_v23  ;;  %vm733_vm14 = vcmp.eq.f32.partialorder %v1574_v41, 0.0 }
 0x1bb   :  { %v547_v63 = vmul.f32 2.0, %v531_v55  ;;  %v540_v4 = vmul.f32 2.0, %v524_v56  ;;  %v633_v6 = vmul.f32 %v1104_v52, %v1559_v26  ;;  %1113 = vrsqrt.f32 %v1598_v59  ;;  %v509_v56 = vld [vmem:[%s2023_s3 + $0x20] sm:$0xff] }
 0x1bc   :  { %v448_v57 = vpop.xlane.xlu0 %447  ;;  %v478_v58 = vpop.xlane.xlu1 %477  ;;  %v579_v62 = vsel %vm578_vm4, %v1557_v23, %v577_v54  ;;  %1115 = vrsqrt.f32 %v1600_v60  ;;  %v734_v23 = vand.u32 2147483648, %v1574_v41  ;;  %vm787_vm15 = vcmp.eq.f32.partialorder %v1598_v59, inf }
 0x1bd   :  { %v1106_v5 = vpop.eup %1105  ;;  %v1622_v14 = vmax.f32 %v547_v63, 1e-12  ;;  %v1630_v1 = vmax.f32 %v540_v4, 1e-12  ;;  %v635_v17 = vsel %vm634_vm2, %v1559_v26, %v633_v6  ;;  %v582_v3 = vsel %vm580_vm5, %v581_v61, %v579_v62 }
 0x1be   :  { %v1108_v8 = vpop.eup %1107  ;;  %v737_v9 = vmul.f32 %v1106_v5, %v1566_v34  ;;  %v532_v19 = vadd.f32 %v1615_v10, %v448_v57  ;;  %v683_v29 = vadd.f32 %v1635_v15, %v478_v58  ;;  %v638_v31 = vsel %vm636_vm3, %v637_v53, %v635_v17 }
 0x1bf   :  { %v626_v22 = vmul.f32 %v1108_v8, %v1568_v35  ;;  %1117 = vrsqrt.f32 %v1622_v14  ;;  %vm789_vm0 = vcmp.eq.f32.partialorder %v1598_v59, 0.0  ;;  %vm571_vm1 = vcmp.eq.f32.partialorder %v1600_v60, inf }
 0x1c0   :  { %v480_v11 = vpop.xlane.xlu0 %479  ;;  %v1617_v12 = vpop.xlane.xlu1 %493  ;;  %v739_v0 = vsel %vm738_vm6, %v1566_v34, %v737_v9  ;;  %1119 = vrsqrt.f32 %v1630_v1  ;;  %v548_v36 = vmul.f32 2.0, %v532_v19  ;;  %v699_v44 = vmul.f32 2.0, %v683_v29 }
 0x1c1   :  { %v1110_v16 = vpop.eup %1109  ;;  %v742_v18 = vsel %vm740_vm8, %v741_v7, %v739_v0  ;;  %v684_v25 = vadd.f32 %v508_v47, %v480_v11  ;;  %v628_v26 = vsel %vm627_vm9, %v1568_v35, %v626_v22  ;;  %vm573_vm2 = vcmp.eq.f32.partialorder %v1600_v60, 0.0 }
 0x1c2   :  { %v1112_v20 = vpop.eup %1111  ;;  %v842_v21 = vsub.f32 %v582_v3, %v742_v18  ;;  %v793_v24 = vmul.f32 %v1110_v16, %v1572_v40  ;;  %v631_v52 = vsel %vm629_vm12, %v630_v13, %v628_v26  ;;  %v574_v54 = vand.u32 2147483648, %v1600_v60 }
 0x1c3   :  { %v730_v28 = vmul.f32 %v1112_v20, %v1574_v41  ;;  %v700_v39 = vmul.f32 2.0, %v684_v25  ;;  %v1684_v55 = vmax.f32 %v548_v36, 1e-12  ;;  %v691_v63 = vadd.f32 %v1580_v46, %v1617_v12 }
 0x1c4   :  { %v496_v27 = vpop.xlane.xlu0 %495  ;;  %v434_v30 = vpop.xlane.xlu1 %433  ;;  %v860_v32 = vadd.f32 %v1590_v49, %v842_v21  ;;  %v795_v33 = vsel %vm794_vm10, %v1572_v40, %v793_v24  ;;  %v790_v40 = vand.u32 2147483648, %v1598_v59  ;;  %v1701_v6 = vmax.f32 %v699_v44, 1e-12  ;;  %v517_v24 = vld [vmem:[%s2023_s3 + $0x60] sm:$0xff] }
 0x1c5   :  { %v798_v34 = vsel %vm796_vm11, %v797_v2, %v795_v33  ;;  %v1114_v42 = vpop.eup %1113  ;;  %v732_v43 = vsel %vm731_vm13, %v1574_v41, %v730_v28  ;;  %v1678_v50 = vmax.f32 %v700_v39, 1e-12  ;;  %v692_v7 = vadd.f32 %v1615_v10, %v496_v27 }
 0x1c6   :  { %v876_v37 = vmax.f32 %v860_v32, 0.0  ;;  %v850_v38 = vsub.f32 %v638_v31, %v798_v34  ;;  %v1116_v45 = vpop.eup %1115  ;;  %v786_v48 = vmul.f32 %v1114_v42, %v1598_v59  ;;  %v735_v61 = vsel %vm733_vm14, %v734_v23, %v732_v43 }
 0x1c7   :  { %v570_v53 = vmul.f32 %v1116_v45, %v1600_v60  ;;  %1121 = vrsqrt.f32 %v1678_v50  ;;  %v707_v10 = vmul.f32 2.0, %v691_v63  ;;  %v708_v0 = vmul.f32 2.0, %v692_v7 }
 0x1c8   :  { %893 = vst.msk [vmem:[%s2025_s7 + $0x8] sm:$0xff] %vm891_vm7, %v876_v37  ;;  %v868_v47 = vadd.f32 %v1590_v49, %v850_v38  ;;  %v430_v51 = vpop.xlane.xlu0 %429  ;;  %v450_v57 = vpop.xlane.xlu1 %449  ;;  %v788_v35 = vsel %vm787_vm15, %v1598_v59, %v786_v48  ;;  %v525_v59 = vadd.f32 %v509_v56, %v434_v30  ;;  %1123 = vrsqrt.f32 %v1684_v55 }
 0x1c9   :  { %v791_v4 = vsel %vm789_vm0, %v790_v40, %v788_v35  ;;  %v572_v5 = vsel %vm571_vm1, %v1600_v60, %v570_v53  ;;  %v1118_v8 = vpop.eup %1117  ;;  %1125 = vrsqrt.f32 %v1701_v6  ;;  %v1715_v60 = vmax.f32 %v707_v10, 1e-12 }
 0x1ca   :  { %v884_v58 = vmax.f32 %v868_v47, 0.0  ;;  %v849_v41 = vsub.f32 %v631_v52, %v791_v4  ;;  %v575_v46 = vsel %vm573_vm2, %v574_v54, %v572_v5  ;;  %v1120_v9 = vpop.eup %1119  ;;  %v541_v17 = vmul.f32 2.0, %v525_v59 }
 0x1cb   :  { %v841_v62 = vsub.f32 %v575_v46, %v735_v61  ;;  %v640_v18 = vmul.f32 %v1118_v8, %v1622_v14  ;;  %v591_v19 = vmul.f32 %v1120_v9, %v1630_v1  ;;  %v1719_v20 = vmax.f32 %v708_v0, 1e-12 }
 0x1cc   :  { %901 = vst.msk [vmem:[%s2025_s7 + $0x48] sm:$0xff] %vm891_vm7, %v884_v58  ;;  %v867_v11 = vadd.f32 %v1590_v49, %v849_v41  ;;  %v436_v12 = vpop.xlane.xlu0 %435  ;;  %v482_v2 = vpop.xlane.xlu1 %481  ;;  %1127 = vrsqrt.f32 %v1715_v60  ;;  %v523_v21 = vadd.f32 %v1635_v15, %v430_v51  ;;  %vm641_vm3 = vcmp.eq.f32.partialorder %v1622_v14, inf  ;;  %v1741_v15 = vld [vmem:[%s2023_s3 + $0x28] sm:$0xff] }
 0x1cd   :  { %v859_v13 = vadd.f32 %v1590_v49, %v841_v62  ;;  %vm643_vm4 = vcmp.eq.f32.partialorder %v1622_v14, 0.0  ;;  %v644_v22 = vand.u32 2147483648, %v1622_v14  ;;  %1129 = vrsqrt.f32 %v1719_v20  ;;  %v1769_v51 = vld [vmem:[%s2023_s3 + $0x68] sm:$0xff] }
 0x1ce   :  { %v883_v16 = vmax.f32 %v867_v11, 0.0  ;;  %vm592_vm5 = vcmp.eq.f32.partialorder %v1630_v1, inf  ;;  %vm594_vm6 = vcmp.eq.f32.partialorder %v1630_v1, 0.0  ;;  %v595_v25 = vand.u32 2147483648, %v1630_v1 }
 0x1cf   :  { %v875_v3 = vmax.f32 %v859_v13, 0.0  ;;  %v1746_v27 = vmax.f32 %v541_v17, 1e-12  ;;  %v642_v23 = vsel %vm641_vm3, %v1622_v14, %v640_v18  ;;  %v593_v29 = vsel %vm592_vm5, %v1630_v1, %v591_v19 }
 0x1d0   :  { %900 = vst.msk [vmem:[%s2025_s7 + $0x40] sm:$0xff] %vm891_vm7, %v883_v16  ;;  %v452_v28 = vpop.xlane.xlu0 %451  ;;  %vm648_vm8 = vcmp.eq.f32.partialorder %v1684_v55, inf  ;;  %v651_v30 = vand.u32 2147483648, %v1684_v55  ;;  %v498_v31 = vpop.xlane.xlu1 %497  ;;  %v539_v33 = vmul.f32 2.0, %v523_v21  ;;  %v533_v34 = vadd.f32 %v517_v24, %v450_v57 }
 0x1d1   :  { %892 = vst.msk [vmem:[%s2025_s7] sm:$0xff] %vm891_vm7, %v875_v3  ;;  %v1122_v32 = vpop.eup %1121  ;;  %v526_v36 = vadd.f32 %v1741_v15, %v436_v12  ;;  %v685_v37 = vadd.f32 %v509_v56, %v482_v2  ;;  %vm752_vm9 = vcmp.eq.f32.partialorder %v1678_v50, inf  ;;  %vm754_vm10 = vcmp.eq.f32.partialorder %v1678_v50, 0.0 }
 0x1d2   :  { %v1124_v26 = vpop.eup %1123  ;;  %v751_v38 = vmul.f32 %v1122_v32, %v1678_v50  ;;  %v755_v39 = vand.u32 2147483648, %v1678_v50  ;;  %vm650_vm11 = vcmp.eq.f32.partialorder %v1684_v55, 0.0  ;;  %1131 = vrsqrt.f32 %v1746_v27 }
 0x1d3   :  { %v1759_v42 = vmax.f32 %v539_v33, 1e-12  ;;  %v549_v43 = vmul.f32 2.0, %v533_v34  ;;  %v693_v40 = vadd.f32 %v517_v24, %v498_v31  ;;  %v645_v44 = vsel %vm643_vm4, %v644_v22, %v642_v23  ;;  %v1126_v52 = vpop.eup %1125  ;;  %v1823_v24 = vld [vmem:[%s2023_s3 + $0x30] sm:$0xff] }
 0x1d4   :  { %v596_v45 = vsel %vm594_vm6, %v595_v25, %v593_v29  ;;  %v753_v47 = vsel %vm752_vm9, %v1678_v50, %v751_v38  ;;  %v701_v48 = vmul.f32 2.0, %v685_v37  ;;  %v647_v53 = vmul.f32 %v1124_v26, %v1684_v55  ;;  %v484_v14 = vpop.xlane.xlu0 %483  ;;  %v438_v10 = vpop.xlane.xlu1 %437  ;;  %v1840_v26 = vld [vmem:[%s2023_s3 + $0x70] sm:$0xff] }
 0x1d5   :  { %v756_v54 = vsel %vm754_vm10, %v755_v39, %v753_v47  ;;  %1133 = vrsqrt.f32 %v1759_v42  ;;  %v542_v56 = vmul.f32 2.0, %v526_v36  ;;  %vm745_vm12 = vcmp.eq.f32.partialorder %v1701_v6, inf }
 0x1d6   :  { %v844_v1 = vsub.f32 %v596_v45, %v756_v54  ;;  %vm801_vm13 = vcmp.eq.f32.partialorder %v1715_v60, inf  ;;  %vm803_vm14 = vcmp.eq.f32.partialorder %v1715_v60, 0.0  ;;  %v1776_v50 = vmax.f32 %v549_v43, 1e-12  ;;  %v1128_v57 = vpop.eup %1127 }
 0x1d7   :  { %v804_v58 = vand.u32 2147483648, %v1715_v60  ;;  %vm808_vm15 = vcmp.eq.f32.partialorder %v1719_v20, inf  ;;  %v534_v61 = vadd.f32 %v1769_v51, %v452_v28  ;;  %v709_v35 = vmul.f32 2.0, %v693_v40  ;;  %v1130_v63 = vpop.eup %1129 }
 0x1d8   :  { %v862_v4 = vadd.f32 %v1590_v49, %v844_v1  ;;  %v800_v5 = vmul.f32 %v1128_v57, %v1715_v60  ;;  %1135 = vrsqrt.f32 %v1776_v50  ;;  %v1784_v7 = vmax.f32 %v701_v48, 1e-12  ;;  %v500_v16 = vpop.xlane.xlu0 %499  ;;  %v454_v32 = vpop.xlane.xlu1 %453  ;;  %v512_v57 = vld [vmem:[%s2023_s3 + $0x38] sm:$0xff] }
 0x1d9   :  { %v649_v41 = vsel %vm648_vm8, %v1684_v55, %v647_v53  ;;  %vm747_vm0 = vcmp.eq.f32.partialorder %v1701_v6, 0.0  ;;  %v807_v46 = vmul.f32 %v1130_v63, %v1719_v20  ;;  %vm810_vm1 = vcmp.eq.f32.partialorder %v1719_v20, 0.0 }
 0x1da   :  { %v1792_v59 = vmax.f32 %v542_v56, 1e-12  ;;  %v744_v8 = vmul.f32 %v1126_v52, %v1701_v6  ;;  %v878_v62 = vmax.f32 %v862_v4, 0.0  ;;  %v802_v9 = vsel %vm801_vm13, %v1715_v60, %v800_v5 }
 0x1db   :  { %v811_v11 = vand.u32 2147483648, %v1719_v20  ;;  %v805_v12 = vsel %vm803_vm14, %v804_v58, %v802_v9  ;;  %v809_v13 = vsel %vm808_vm15, %v1719_v20, %v807_v46  ;;  %v550_v0 = vmul.f32 2.0, %v534_v61 }
 0x1dc   :  { %v1804_v2 = vmax.f32 %v709_v35, 1e-12  ;;  %v652_v17 = vsel %vm650_vm11, %v651_v30, %v649_v41  ;;  %895 = vst.msk [vmem:[%s2025_s7 + $0x18] sm:$0xff] %vm891_vm7, %v878_v62  ;;  %v851_v3 = vsub.f32 %v645_v44, %v805_v12  ;;  %1137 = vrsqrt.f32 %v1784_v7  ;;  %v1132_v60 = vpop.eup %1131  ;;  %v440_v38 = vpop.xlane.xlu0 %439 }
 0x1dd   :  { %v812_v18 = vsel %vm810_vm1, %v811_v11, %v809_v13  ;;  %v748_v19 = vand.u32 2147483648, %v1701_v6  ;;  %1139 = vrsqrt.f32 %v1792_v59  ;;  %v686_v21 = vadd.f32 %v1741_v15, %v484_v14  ;;  %v486_v58 = vpop.xlane.xlu1 %485 }
 0x1de   :  { %v852_v20 = vsub.f32 %v652_v17, %v812_v18  ;;  %v869_v55 = vadd.f32 %v1590_v49, %v851_v3  ;;  %vm599_vm2 = vcmp.eq.f32.partialorder %v1746_v27, inf  ;;  %vm601_vm3 = vcmp.eq.f32.partialorder %v1746_v27, 0.0 }
 0x1df   :  { %v602_v22 = vand.u32 2147483648, %v1746_v27  ;;  %v1134_v25 = vpop.eup %1133  ;;  %v746_v28 = vsel %vm745_vm12, %v1701_v6, %v744_v8  ;;  %v1829_v23 = vmax.f32 %v550_v0, 1e-12  ;;  %1141 = vrsqrt.f32 %v1804_v2 }
 0x1e0   :  { %v870_v15 = vadd.f32 %v1590_v49, %v852_v20  ;;  %v885_v29 = vmax.f32 %v869_v55, 0.0  ;;  %v598_v30 = vmul.f32 %v1132_v60, %v1746_v27  ;;  %v584_v31 = vmul.f32 %v1134_v25, %v1759_v42  ;;  %v456_v5 = vpop.xlane.xlu0 %455 }
 0x1e1   :  { %vm585_vm4 = vcmp.eq.f32.partialorder %v1759_v42, inf  ;;  %v588_v34 = vand.u32 2147483648, %v1759_v42  ;;  %v702_v36 = vmul.f32 2.0, %v686_v21  ;;  %v527_v37 = vadd.f32 %v1823_v24, %v438_v10  ;;  %v502_v20 = vpop.xlane.xlu1 %501 }
 0x1e2   :  { %v886_v33 = vmax.f32 %v870_v15, 0.0  ;;  %v1136_v39 = vpop.eup %1135  ;;  %v749_v43 = vsel %vm747_vm0, %v748_v19, %v746_v28  ;;  %902 = vst.msk [vmem:[%s2025_s7 + $0x50] sm:$0xff] %vm891_vm7, %v885_v29  ;;  %v586_v40 = vsel %vm585_vm4, %v1759_v42, %v584_v31  ;;  %vm587_vm5 = vcmp.eq.f32.partialorder %v1759_v42, 0.0  ;;  %v520_v19 = vld [vmem:[%s2023_s3 + $0x78] sm:$0xff] }
 0x1e3   :  { %v694_v44 = vadd.f32 %v1769_v51, %v500_v16  ;;  %v589_v45 = vsel %vm587_vm5, %v588_v34, %v586_v40  ;;  %vm655_vm6 = vcmp.eq.f32.partialorder %v1776_v50, inf  ;;  %1143 = vrsqrt.f32 %v1829_v23 }
 0x1e4   :  { %903 = vst.msk [vmem:[%s2025_s7 + $0x58] sm:$0xff] %vm891_vm7, %v886_v33  ;;  %v1857_v6 = vmax.f32 %v702_v36, 1e-12  ;;  %v600_v47 = vsel %vm599_vm2, %v1746_v27, %v598_v30  ;;  %v843_v48 = vsub.f32 %v589_v45, %v749_v43  ;;  %v535_v51 = vadd.f32 %v1840_v26, %v454_v32 }
 0x1e5   :  { %v710_v42 = vmul.f32 2.0, %v694_v44  ;;  %v654_v52 = vmul.f32 %v1136_v39, %v1776_v50  ;;  %vm657_vm8 = vcmp.eq.f32.partialorder %v1776_v50, 0.0  ;;  %v543_v53 = vmul.f32 2.0, %v527_v37 }
 0x1e6   :  { %1145 = vrsqrt.f32 %v1857_v6  ;;  %v1138_v54 = vpop.eup %1137  ;;  %v861_v56 = vadd.f32 %v1590_v49, %v843_v48  ;;  %v658_v14 = vand.u32 2147483648, %v1776_v50  ;;  %vm606_vm9 = vcmp.eq.f32.partialorder %v1792_v59, inf }
 0x1e7   :  { %v609_v1 = vand.u32 2147483648, %v1792_v59  ;;  %v1140_v61 = vpop.eup %1139  ;;  %v603_v35 = vsel %vm601_vm3, %v602_v22, %v600_v47  ;;  %v758_v63 = vmul.f32 %v1138_v54, %v1784_v7  ;;  %vm759_vm10 = vcmp.eq.f32.partialorder %v1784_v7, inf }
 0x1e8   :  { %v1877_v4 = vmax.f32 %v710_v42, 1e-12  ;;  %v877_v41 = vmax.f32 %v861_v56, 0.0  ;;  %vm761_vm11 = vcmp.eq.f32.partialorder %v1784_v7, 0.0  ;;  %v762_v46 = vand.u32 2147483648, %v1784_v7 }
 0x1e9   :  { %v551_v8 = vmul.f32 2.0, %v535_v51  ;;  %v1142_v62 = vpop.eup %1141  ;;  %v656_v9 = vsel %vm655_vm6, %v1776_v50, %v654_v52  ;;  %v760_v27 = vsel %vm759_vm10, %v1784_v7, %v758_v63  ;;  %v1885_v11 = vmax.f32 %v543_v53, 1e-12  ;;  %v488_v50 = vpop.xlane.xlu0 %487 }
 0x1ea   :  { %v528_v10 = vadd.f32 %v512_v57, %v440_v38  ;;  %894 = vst.msk [vmem:[%s2025_s7 + $0x10] sm:$0xff] %vm891_vm7, %v877_v41  ;;  %v605_v12 = vmul.f32 %v1140_v61, %v1792_v59  ;;  %vm608_vm12 = vcmp.eq.f32.partialorder %v1792_v59, 0.0  ;;  %v763_v13 = vsel %vm761_vm11, %v762_v46, %v760_v27 }
 0x1eb   :  { %v814_v0 = vmul.f32 %v1142_v62, %v1804_v2  ;;  %vm815_vm13 = vcmp.eq.f32.partialorder %v1804_v2, inf  ;;  %v845_v16 = vsub.f32 %v603_v35, %v763_v13  ;;  %v818_v7 = vand.u32 2147483648, %v1804_v2 }
 0x1ec   :  { %1147 = vrsqrt.f32 %v1877_v4  ;;  %v687_v17 = vadd.f32 %v1823_v24, %v486_v58  ;;  %v659_v3 = vsel %vm657_vm8, %v658_v14, %v656_v9  ;;  %vm817_vm14 = vcmp.eq.f32.partialorder %v1804_v2, 0.0 }
 0x1ed   :  { %v816_v18 = vsel %vm815_vm13, %v1804_v2, %v814_v0  ;;  %v1902_v60 = vmax.f32 %v551_v8, 1e-12  ;;  %v1144_v21 = vpop.eup %1143  ;;  %v863_v55 = vadd.f32 %v1590_v49, %v845_v16  ;;  %1149 = vrsqrt.f32 %v1885_v11  ;;  %v504_v48 = vpop.xlane.xlu0 %503 }
 0x1ee   :  { %v819_v22 = vsel %vm817_vm14, %v818_v7, %v816_v18  ;;  %v544_v24 = vmul.f32 2.0, %v528_v10  ;;  %v607_v25 = vsel %vm606_vm9, %v1792_v59, %v605_v12  ;;  %vm766_vm15 = vcmp.eq.f32.partialorder %v1857_v6, inf }
 0x1ef   :  { %v853_v2 = vsub.f32 %v659_v3, %v819_v22  ;;  %vm768_vm0 = vcmp.eq.f32.partialorder %v1857_v6, 0.0  ;;  %v879_v15 = vmax.f32 %v863_v55, 0.0  ;;  %v703_v29 = vmul.f32 2.0, %v687_v17 }
 0x1f0   :  { %v1146_v28 = vpop.eup %1145  ;;  %v536_v30 = vadd.f32 %v520_v19, %v456_v5  ;;  %v695_v31 = vadd.f32 %v1840_v26, %v502_v20  ;;  %v661_v32 = vmul.f32 %v1144_v21, %v1829_v23  ;;  %v769_v36 = vand.u32 2147483648, %v1857_v6 }
 0x1f1   :  { %v871_v33 = vadd.f32 %v1590_v49, %v853_v2  ;;  %v765_v34 = vmul.f32 %v1146_v28, %v1857_v6  ;;  %896 = vst.msk [vmem:[%s2025_s7 + $0x20] sm:$0xff] %vm891_vm7, %v879_v15  ;;  %1151 = vrsqrt.f32 %v1902_v60  ;;  %v1924_v37 = vmax.f32 %v544_v24, 1e-12 }
 0x1f2   :  { %v719_v38 = vmax.f32 %v703_v29, 1e-12  ;;  %v552_v39 = vmul.f32 2.0, %v536_v30  ;;  %v711_v40 = vmul.f32 2.0, %v695_v31  ;;  %v688_v44 = vadd.f32 %v512_v57, %v488_v50 }
 0x1f3   :  { %v887_v26 = vmax.f32 %v871_v33, 0.0  ;;  %v767_v43 = vsel %vm766_vm15, %v1857_v6, %v765_v34  ;;  %v610_v45 = vsel %vm608_vm12, %v609_v1, %v607_v25  ;;  %vm662_vm1 = vcmp.eq.f32.partialorder %v1829_v23, inf }
 0x1f4   :  { %v770_v47 = vsel %vm768_vm0, %v769_v36, %v767_v43  ;;  %1153 = vrsqrt.f32 %v719_v38  ;;  %v663_v52 = vsel %vm662_vm1, %v1829_v23, %v661_v32  ;;  %v1942_v59 = vmax.f32 %v552_v39, 1e-12 }
 0x1f5   :  { %904 = vst.msk [vmem:[%s2025_s7 + $0x60] sm:$0xff] %vm891_vm7, %v887_v26  ;;  %v846_v42 = vsub.f32 %v610_v45, %v770_v47  ;;  %1155 = vrsqrt.f32 %v1924_v37  ;;  %v1944_v53 = vmax.f32 %v711_v40, 1e-12  ;;  %v704_v56 = vmul.f32 2.0, %v688_v44 }
 0x1f6   :  { %v1148_v51 = vpop.eup %1147  ;;  %v696_v14 = vadd.f32 %v520_v19, %v504_v48  ;;  %vm664_vm2 = vcmp.eq.f32.partialorder %v1829_v23, 0.0  ;;  %v665_v57 = vand.u32 2147483648, %v1829_v23  ;;  %vm822_vm3 = vcmp.eq.f32.partialorder %v1877_v4, inf }
 0x1f7   :  { %v864_v6 = vadd.f32 %v1590_v49, %v846_v42  ;;  %v821_v54 = vmul.f32 %v1148_v51, %v1877_v4  ;;  %v1150_v1 = vpop.eup %1149  ;;  %v825_v58 = vand.u32 2147483648, %v1877_v4  ;;  %vm824_vm4 = vcmp.eq.f32.partialorder %v1877_v4, 0.0 }
 0x1f8   :  { %1157 = vrsqrt.f32 %v1944_v53  ;;  %v666_v63 = vsel %vm664_vm2, %v665_v57, %v663_v52  ;;  %v612_v23 = vmul.f32 %v1150_v1, %v1885_v11  ;;  %v720_v46 = vmax.f32 %v704_v56, 1e-12 }
 0x1f9   :  { %v880_v61 = vmax.f32 %v864_v6, 0.0  ;;  %v823_v35 = vsel %vm822_vm3, %v1877_v4, %v821_v54  ;;  %1159 = vrsqrt.f32 %v1942_v59  ;;  %v712_v8 = vmul.f32 2.0, %v696_v14 }
 0x1fa   :  { %v826_v5 = vsel %vm824_vm4, %v825_v58, %v823_v35  ;;  %1161 = vrsqrt.f32 %v720_v46  ;;  %vm613_vm5 = vcmp.eq.f32.partialorder %v1885_v11, inf  ;;  %v616_v12 = vand.u32 2147483648, %v1885_v11 }
 0x1fb   :  { %897 = vst.msk [vmem:[%s2025_s7 + $0x28] sm:$0xff] %vm891_vm7, %v880_v61  ;;  %v854_v41 = vsub.f32 %v666_v63, %v826_v5  ;;  %v1152_v62 = vpop.eup %1151  ;;  %v1963_v27 = vmax.f32 %v712_v8, 1e-12  ;;  %v614_v10 = vsel %vm613_vm5, %v1885_v11, %v612_v23  ;;  %vm773_vm6 = vcmp.eq.f32.partialorder %v719_v38, inf }
 0x1fc   :  { %v668_v7 = vmul.f32 %v1152_v62, %v1902_v60  ;;  %v776_v17 = vand.u32 2147483648, %v719_v38  ;;  %vm615_vm8 = vcmp.eq.f32.partialorder %v1885_v11, 0.0  ;;  %vm775_vm9 = vcmp.eq.f32.partialorder %v719_v38, 0.0 }
 0x1fd   :  { %v872_v9 = vadd.f32 %v1590_v49, %v854_v41  ;;  %1163 = vrsqrt.f32 %v1963_v27  ;;  %v617_v18 = vsel %vm615_vm8, %v616_v12, %v614_v10  ;;  %vm669_vm10 = vcmp.eq.f32.partialorder %v1902_v60, inf }
 0x1fe   :  { %v1154_v4 = vpop.eup %1153  ;;  %v670_v22 = vsel %vm669_vm10, %v1902_v60, %v668_v7  ;;  %v672_v50 = vand.u32 2147483648, %v1902_v60  ;;  %vm829_vm11 = vcmp.eq.f32.partialorder %v1944_v53, inf  ;;  %v832_v2 = vand.u32 2147483648, %v1944_v53 }
 0x1ff   :  { %v888_v13 = vmax.f32 %v872_v9, 0.0  ;;  %v772_v0 = vmul.f32 %v1154_v4, %v719_v38  ;;  %v1156_v16 = vpop.eup %1155  ;;  %vm671_vm12 = vcmp.eq.f32.partialorder %v1902_v60, 0.0  ;;  %vm620_vm13 = vcmp.eq.f32.partialorder %v1924_v37, inf }
 0x200   :  { %v619_v24 = vmul.f32 %v1156_v16, %v1924_v37  ;;  %vm831_vm14 = vcmp.eq.f32.partialorder %v1944_v53, 0.0  ;;  %v673_v29 = vsel %vm671_vm12, %v672_v50, %v670_v22  ;;  %vm622_vm15 = vcmp.eq.f32.partialorder %v1924_v37, 0.0 }
 0x201   :  { %905 = vst.msk [vmem:[%s2025_s7 + $0x68] sm:$0xff] %vm891_vm7, %v888_v13  ;;  %v774_v3 = vsel %vm773_vm6, %v719_v38, %v772_v0  ;;  %v623_v60 = vand.u32 2147483648, %v1924_v37  ;;  %vm676_vm0 = vcmp.eq.f32.partialorder %v1942_v59, inf  ;;  %vm780_vm1 = vcmp.eq.f32.partialorder %v720_v46, inf }
 0x202   :  { %v777_v19 = vsel %vm775_vm9, %v776_v17, %v774_v3  ;;  %v1158_v20 = vpop.eup %1157  ;;  %v621_v33 = vsel %vm620_vm13, %v1924_v37, %v619_v24  ;;  %v783_v38 = vand.u32 2147483648, %v720_v46  ;;  %v679_v26 = vand.u32 2147483648, %v1942_v59 }
 0x203   :  { %v847_v21 = vsub.f32 %v617_v18, %v777_v19  ;;  %v1160_v55 = vpop.eup %1159  ;;  %v828_v11 = vmul.f32 %v1158_v20, %v1944_v53  ;;  %vm782_vm2 = vcmp.eq.f32.partialorder %v720_v46, 0.0  ;;  %v624_v44 = vsel %vm622_vm15, %v623_v60, %v621_v33 }
 0x204   :  { %v1162_v15 = vpop.eup %1161  ;;  %v675_v31 = vmul.f32 %v1160_v55, %v1942_v59  ;;  %vm836_vm3 = vcmp.eq.f32.partialorder %v1963_v27, inf  ;;  %v839_v51 = vand.u32 2147483648, %v1963_v27  ;;  %vm678_vm4 = vcmp.eq.f32.partialorder %v1942_v59, 0.0 }
 0x205   :  { %v865_v25 = vadd.f32 %v1590_v49, %v847_v21  ;;  %v830_v28 = vsel %vm829_vm11, %v1944_v53, %v828_v11  ;;  %v779_v36 = vmul.f32 %v1162_v15, %v720_v46  ;;  %vm838_vm5 = vcmp.eq.f32.partialorder %v1963_v27, 0.0 }
 0x206   :  { %v833_v32 = vsel %vm831_vm14, %v832_v2, %v830_v28  ;;  %v677_v45 = vsel %vm676_vm0, %v1942_v59, %v675_v31 }
 0x207   :  { %v881_v30 = vmax.f32 %v865_v25, 0.0  ;;  %v855_v34 = vsub.f32 %v673_v29, %v833_v32  ;;  %v1164_v39 = vpop.eup %1163  ;;  %v781_v40 = vsel %vm780_vm1, %v720_v46, %v779_v36  ;;  %v680_v53 = vsel %vm678_vm4, %v679_v26, %v677_v45 }
 0x208   :  { %v784_v37 = vsel %vm782_vm2, %v783_v38, %v781_v40  ;;  %v835_v47 = vmul.f32 %v1164_v39, %v1963_v27 }
 0x209   :  { %898 = vst.msk [vmem:[%s2025_s7 + $0x30] sm:$0xff] %vm891_vm7, %v881_v30  ;;  %v873_v43 = vadd.f32 %v1590_v49, %v855_v34  ;;  %v848_v42 = vsub.f32 %v624_v44, %v784_v37 }
 0x20a   :  { %v837_v52 = vsel %vm836_vm3, %v1963_v27, %v835_v47 }
 0x20b   :  { %v889_v48 = vmax.f32 %v873_v43, 0.0  ;;  %v866_v6 = vadd.f32 %v1590_v49, %v848_v42  ;;  %v840_v54 = vsel %vm838_vm5, %v839_v51, %v837_v52 }
 0x20c   :  { %v856_v56 = vsub.f32 %v680_v53, %v840_v54 }
 0x20d   :  { %906 = vst.msk [vmem:[%s2025_s7 + $0x70] sm:$0xff] %vm891_vm7, %v889_v48  ;;  %v882_v14 = vmax.f32 %v866_v6, 0.0 }
 0x20e   :  { %v874_v1 = vadd.f32 %v1590_v49, %v856_v56 }
 0x20f   :  { %899 = vst.msk [vmem:[%s2025_s7 + $0x38] sm:$0xff] %vm891_vm7, %v882_v14 }
 0x210   :  { %v890_v59 = vmax.f32 %v874_v1, 0.0 }
 0x212   :  { %907 = vst.msk [vmem:[%s2025_s7 + $0x78] sm:$0xff] %vm891_vm7, %v890_v59 }

</bundles_post_ra>
